<compile_context>
chip_gen: v7x
topology: tpu7x:2x2x1
jax: 0.10.0
libtpu: 0.0.40
codegen_flags: <defaults>
</compile_context>

<pallas_src>
import functools
import math

import jax
import jax.numpy as jnp
from jax.experimental import pallas as pl
from jax.experimental.pallas import tpu as pltpu

LEAKY_SLOPE = 0.01   # nn.LeakyReLU default
BN_EPS = 1e-5        # nn.BatchNorm2d default
LANES = 128


def _round_up(x, m):
    return (x + m - 1) // m * m


def _conv_lrelu_stats_kernel(p_ref, w_ref, b_ref, cmask_ref,
                             lrelu_ref, stats_ref, *, m_total, tm):
    """Phase 1 (per row tile): one im2col matmul + fused elementwise/reductions.

    p_ref     : (TM, 9*Cin)    im2col patches tile
    w_ref     : (9*Cin, Cpad)  conv weight (lane-padded)
    b_ref     : (1, Cpad)      conv bias (lane-padded)
    cmask_ref : (1, Cpad)      0 for "removed" filters / padded channels
    lrelu_ref : (TM, Cpad)     LeakyReLU(conv) tile (lane-dense output)
    stats_ref : (1, 8, Cpad)   rows: [sum(acc^2), sum(lr), sum(lr^2), 0...]
    """
    acc = jnp.dot(p_ref[...], w_ref[...], preferred_element_type=jnp.float32)
    acc = (acc + b_ref[...]) * cmask_ref[...]

    if m_total % tm != 0:
        # Zero rows belonging to the padded tail of the flattened N*H*W axis
        # so they do not pollute the batch statistics.
        row = jax.lax.broadcasted_iota(jnp.int32, (tm, 1), 0) + pl.program_id(0) * tm
        acc = acc * (row < m_total).astype(jnp.float32)

    # Single fused traversal of the (TM, Cpad) accumulator.
    sq = jnp.sum(acc * acc, axis=0, keepdims=True)                   # (1, C)
    lr = jnp.where(acc > 0, acc, LEAKY_SLOPE * acc)
    s1 = jnp.sum(lr, axis=0, keepdims=True)                          # (1, C)
    s2 = jnp.sum(lr * lr, axis=0, keepdims=True)                     # (1, C)

    lrelu_ref[...] = lr
    c = lrelu_ref.shape[-1]
    pad = jnp.zeros((5, c), jnp.float32)
    stats_ref[...] = jnp.concatenate([sq, s1, s2, pad], axis=0)[None]


def _bn_apply_kernel(lr_ref, scale_ref, shift_ref, out_ref):
    """Phase 2 (per row tile): folded BatchNorm = one FMA per element."""
    out_ref[...] = lr_ref[...] * scale_ref[...] + shift_ref[...]


def net_forward(x_nchw, w_oihw, bias, prev_sum, gamma, beta,
                *, block_rows=512, compute_dtype=jnp.float32):
    """PyTorch-convention inputs (NCHW / OIHW); returns (out_nchw, new_activations_sum)."""
    N, Cin, H, W = x_nchw.shape
    Cout = w_oihw.shape[0]
    M = N * H * W
    K = 9 * Cin
    Cpad = max(LANES, _round_up(Cout, LANES))        # lane-dense channel axis

    TM = _round_up(min(block_rows, _round_up(M, 8)), 8)
    M_pad = _round_up(M, TM)
    n_tiles = M_pad // TM

    # ---- wrapper glue: layout + im2col (cheap, data-independent XLA) -------
    x_nhwc = jnp.transpose(x_nchw, (0, 2, 3, 1)).astype(compute_dtype)
    x_pad = jnp.pad(x_nhwc, ((0, 0), (1, 1), (1, 1), (0, 0)))
    taps = [x_pad[:, dy:dy + H, dx:dx + W, :] for dy in range(3) for dx in range(3)]
    patches = jnp.concatenate(taps, axis=-1).reshape(M, K)
    if M_pad != M:
        patches = jnp.pad(patches, ((0, M_pad - M), (0, 0)))

    # Weight (Cout, Cin, 3, 3) -> (dy, dx, ci, co) -> (K, Cout) -> lane pad.
    w_k = jnp.transpose(w_oihw, (2, 3, 1, 0)).reshape(K, Cout).astype(compute_dtype)
    w_k = jnp.pad(w_k, ((0, 0), (0, Cpad - Cout)))

    removed = jnp.logical_and(jnp.all(w_oihw == 0, axis=(1, 2, 3)), bias == 0)
    cmask = jnp.where(removed, 0.0, 1.0).astype(jnp.float32)
    cmask = jnp.pad(cmask, (0, Cpad - Cout)).reshape(1, Cpad)        # padded ch -> 0
    b_pad = jnp.pad(bias.astype(jnp.float32), (0, Cpad - Cout)).reshape(1, Cpad)

    cparams = pltpu.CompilerParams(
        dimension_semantics=("parallel",),          # shards across TCs on v7x
        vmem_limit_bytes=32 * 1024 * 1024,          # safe within v7x's 64 MiB
    )

    # ---- phase 1: conv + LeakyReLU + per-tile partial statistics -----------
    kern1 = functools.partial(_conv_lrelu_stats_kernel, m_total=M, tm=TM)
    lrelu, stats = pl.pallas_call(
        kern1,
        grid=(n_tiles,),
        in_specs=[
            pl.BlockSpec((TM, K), lambda i: (i, 0)),
            pl.BlockSpec((K, Cpad), lambda i: (0, 0)),
            pl.BlockSpec((1, Cpad), lambda i: (0, 0)),
            pl.BlockSpec((1, Cpad), lambda i: (0, 0)),
        ],
        out_specs=(
            pl.BlockSpec((TM, Cpad), lambda i: (i, 0)),
            pl.BlockSpec((1, 8, Cpad), lambda i: (i, 0, 0)),
        ),
        out_shape=(
            jax.ShapeDtypeStruct((M_pad, Cpad), jnp.float32),
            jax.ShapeDtypeStruct((n_tiles, 8, Cpad), jnp.float32),
        ),
        compiler_params=cparams,
    )(patches, w_k, b_pad, cmask)

    # ---- tiny cross-tile reduction + BN folding (negligible XLA work) ------
    tot = jnp.sum(stats, axis=0)                       # (8, Cpad)
    sq_sum, s1, s2 = tot[0], tot[1], tot[2]
    new_actsum = prev_sum + sq_sum[:Cout] / M
    mean = s1 / M
    var = jnp.maximum(s2 / M - mean * mean, 0.0)       # biased variance
    inv_std = jax.lax.rsqrt(var + BN_EPS)
    gamma_p = jnp.pad(gamma.astype(jnp.float32), (0, Cpad - Cout), constant_values=1.0)
    beta_p = jnp.pad(beta.astype(jnp.float32), (0, Cpad - Cout))
    scale = (gamma_p * inv_std).reshape(1, Cpad)
    shift = (beta_p - mean * gamma_p * inv_std).reshape(1, Cpad)

    # ---- phase 2: apply folded BatchNorm (single FMA per element) ----------
    y = pl.pallas_call(
        _bn_apply_kernel,
        grid=(n_tiles,),
        in_specs=[
            pl.BlockSpec((TM, Cpad), lambda i: (i, 0)),
            pl.BlockSpec((1, Cpad), lambda i: (0, 0)),
            pl.BlockSpec((1, Cpad), lambda i: (0, 0)),
        ],
        out_specs=pl.BlockSpec((TM, Cpad), lambda i: (i, 0)),
        out_shape=jax.ShapeDtypeStruct((M_pad, Cpad), jnp.float32),
        compiler_params=cparams,
    )(lrelu, scale, shift)

    out_nhwc = y[:M, :Cout].reshape(N, H, W, Cout)
    out_nchw = jnp.transpose(out_nhwc, (0, 3, 1, 2))
    return out_nchw, new_actsum


def _reference(x_nchw, w_oihw, bias, prev_sum, gamma, beta):
    """Pure-JAX reference for a sanity check."""
    conv = jax.lax.conv_general_dilated(
        x_nchw, w_oihw, window_strides=(1, 1), padding=((1, 1), (1, 1)),
        dimension_numbers=("NCHW", "OIHW", "NCHW"))
    conv = conv + bias[None, :, None, None]
    removed = jnp.logical_and(jnp.all(w_oihw == 0, axis=(1, 2, 3)), bias == 0)
    conv = conv * jnp.where(removed, 0.0, 1.0)[None, :, None, None]
    n_el = conv.shape[0] * conv.shape[2] * conv.shape[3]
    new_sum = prev_sum + jnp.sum(conv ** 2, axis=(0, 2, 3)) / n_el
    lrelu = jnp.where(conv > 0, conv, LEAKY_SLOPE * conv)
    mean = jnp.mean(lrelu, axis=(0, 2, 3), keepdims=True)
    var = jnp.mean((lrelu - mean) ** 2, axis=(0, 2, 3), keepdims=True)
    y = (lrelu - mean) * jax.lax.rsqrt(var + BN_EPS)
    y = y * gamma[None, :, None, None] + beta[None, :, None, None]
    return y, new_sum


if __name__ == "__main__":
    # Small shapes consistent with the module: batch=2, Cin=4, Cout=8, spatial=16.
    N, Cin, Cout, H, W = 2, 4, 8, 16, 16

    key = jax.random.PRNGKey(0)
    kx, kw, kb = jax.random.split(key, 3)
    x = jax.random.normal(kx, (N, Cin, H, W), dtype=jnp.float32)

    # Deterministic Conv2d-like init (kaiming-uniform-ish bounds).
    fan_in = Cin * 3 * 3
    bound = 1.0 / math.sqrt(float(fan_in))
    w = jax.random.uniform(kw, (Cout, Cin, 3, 3), minval=-bound, maxval=bound,
                           dtype=jnp.float32)
    b = jax.random.uniform(kb, (Cout,), minval=-bound, maxval=bound, dtype=jnp.float32)
    # Zero out filter 2 entirely to exercise the "removed filter" path.
    w = w.at[2].set(0.0)
    b = b.at[2].set(0.0)

    prev_sum = jnp.zeros((Cout,), jnp.float32)   # conv1_activations_sum (reset state)
    gamma = jnp.ones((Cout,), jnp.float32)       # BatchNorm weight
    beta = jnp.zeros((Cout,), jnp.float32)       # BatchNorm bias

    # block_rows=128 gives a 4-step pipelined grid at this toy size
    # (default 512-row tiles are the right choice at realistic sizes).
    out, new_sum = net_forward(x, w, b, prev_sum, gamma, beta, block_rows=128)
    jax.block_until_ready((out, new_sum))

    out_ref, sum_ref = _reference(x, w, b, prev_sum, gamma, beta)
    assert out.shape == (N, Cout, H, W)
    assert jnp.allclose(out, out_ref, atol=3e-4, rtol=3e-4), \
        float(jnp.max(jnp.abs(out - out_ref)))
    assert jnp.allclose(new_sum, sum_ref, atol=3e-4, rtol=3e-4), \
        float(jnp.max(jnp.abs(new_sum - sum_ref)))

    print("KERNEL_OK")
</pallas_src>

<mosaic_0001>
module attributes {stable_mosaic.version = 11 : i64} {
  func.func @_conv_lrelu_stats_kernel(%arg0: i32, %arg1: memref<128x36xf32, #tpu.memory_space<vmem>>, %arg2: memref<36x128xf32, #tpu.memory_space<vmem>>, %arg3: memref<1x128xf32, #tpu.memory_space<vmem>>, %arg4: memref<1x128xf32, #tpu.memory_space<vmem>>, %arg5: memref<128x128xf32, #tpu.memory_space<vmem>>, %arg6: memref<1x8x128xf32, #tpu.memory_space<vmem>>) attributes {dimension_semantics = [#tpu.dimension_semantics<parallel>], iteration_bounds = array<i64: 4>, scalar_prefetch = 0 : i64, scratch_operands = 0 : i64, tpu.core_type = #tpu.core_type<tc>, window_params = [{transform_indices = @transform_0, window_bounds = array<i64: 128, 36>}, {pipeline_mode = #tpu.pipeline_mode<synchronous>, transform_indices = @transform_1, window_bounds = array<i64: 36, 128>}, {pipeline_mode = #tpu.pipeline_mode<synchronous>, transform_indices = @transform_2, window_bounds = array<i64: 1, 128>}, {pipeline_mode = #tpu.pipeline_mode<synchronous>, transform_indices = @transform_3, window_bounds = array<i64: 1, 128>}, {transform_indices = @transform_4, window_bounds = array<i64: 128, 128>}, {transform_indices = @transform_5, window_bounds = array<i64: 1, 8, 128>}]} {
    %c0 = arith.constant 0 : index
    %c0_0 = arith.constant 0 : index
    %0 = vector.load %arg1[%c0, %c0_0] : memref<128x36xf32, #tpu.memory_space<vmem>>, vector<128x36xf32>
    %c0_1 = arith.constant 0 : index
    %c0_2 = arith.constant 0 : index
    %1 = vector.load %arg2[%c0_1, %c0_2] : memref<36x128xf32, #tpu.memory_space<vmem>>, vector<36x128xf32>
    %cst = arith.constant dense<0.000000e+00> : vector<128x128xf32>
    %2 = tpu.matmul %0, %1, %cst {dimension_numbers = #tpu.dot_dimension_numbers<[1], [0], [0], [1], [0, 0, 1, 1], [], []>} : vector<128x36xf32>, vector<36x128xf32>, vector<128x128xf32> -> vector<128x128xf32>
    %c0_3 = arith.constant 0 : index
    %c0_4 = arith.constant 0 : index
    %3 = vector.load %arg3[%c0_3, %c0_4] : memref<1x128xf32, #tpu.memory_space<vmem>>, vector<1x128xf32>
    %4 = vector.broadcast %3 : vector<1x128xf32> to vector<128x128xf32>
    %5 = arith.addf %2, %4 : vector<128x128xf32>
    %c0_5 = arith.constant 0 : index
    %c0_6 = arith.constant 0 : index
    %6 = vector.load %arg4[%c0_5, %c0_6] : memref<1x128xf32, #tpu.memory_space<vmem>>, vector<1x128xf32>
    %7 = vector.broadcast %6 : vector<1x128xf32> to vector<128x128xf32>
    %8 = arith.mulf %5, %7 : vector<128x128xf32>
    %9 = arith.mulf %8, %8 : vector<128x128xf32>
    %cst_7 = arith.constant dense<0.000000e+00> : vector<128xf32>
    %10 = vector.multi_reduction <add>, %9, %cst_7 [0] : vector<128x128xf32> to vector<128xf32>
    %11 = vector.shape_cast %10 : vector<128xf32> to vector<1x128xf32>
    %cst_8 = arith.constant 0.000000e+00 : f32
    %12 = vector.broadcast %cst_8 : f32 to vector<128x128xf32>
    %13 = arith.cmpf ogt, %8, %12 : vector<128x128xf32>
    %cst_9 = arith.constant 0.00999999977 : f32
    %14 = vector.broadcast %cst_9 : f32 to vector<128x128xf32>
    %15 = arith.mulf %14, %8 : vector<128x128xf32>
    %16 = arith.select %13, %8, %15 : vector<128x128xi1>, vector<128x128xf32>
    %cst_10 = arith.constant dense<0.000000e+00> : vector<128xf32>
    %17 = vector.multi_reduction <add>, %16, %cst_10 [0] : vector<128x128xf32> to vector<128xf32>
    %18 = vector.shape_cast %17 : vector<128xf32> to vector<1x128xf32>
    %19 = arith.mulf %16, %16 : vector<128x128xf32>
    %cst_11 = arith.constant dense<0.000000e+00> : vector<128xf32>
    %20 = vector.multi_reduction <add>, %19, %cst_11 [0] : vector<128x128xf32> to vector<128xf32>
    %21 = vector.shape_cast %20 : vector<128xf32> to vector<1x128xf32>
    %c0_12 = arith.constant 0 : index
    %c0_13 = arith.constant 0 : index
    %22 = vector.load %arg5[%c0_12, %c0_13] : memref<128x128xf32, #tpu.memory_space<vmem>>, vector<128x128xf32>
    tpu.vector_store %arg5[%c0_12, %c0_13], %16 {strides = array<i32>} : memref<128x128xf32, #tpu.memory_space<vmem>>, vector<128x128xf32>,
    %cst_14 = arith.constant 0.000000e+00 : f32
    %23 = vector.broadcast %cst_14 : f32 to vector<5x128xf32>
    %24 = tpu.concatenate %11, %18, %21, %23 in 0 : vector<1x128xf32>, vector<1x128xf32>, vector<1x128xf32>, vector<5x128xf32> -> vector<8x128xf32>
    %25 = vector.shape_cast %24 : vector<8x128xf32> to vector<1x8x128xf32>
    %c0_15 = arith.constant 0 : index
    %c0_16 = arith.constant 0 : index
    %c0_17 = arith.constant 0 : index
    %26 = vector.load %arg6[%c0_15, %c0_16, %c0_17] : memref<1x8x128xf32, #tpu.memory_space<vmem>>, vector<1x8x128xf32>
    tpu.vector_store %arg6[%c0_15, %c0_16, %c0_17], %25 {strides = array<i32>} : memref<1x8x128xf32, #tpu.memory_space<vmem>>, vector<1x8x128xf32>,
    return
  }
  func.func @transform_0(%arg0: i32) -> (i32, i32) {
    %c0_i32 = arith.constant 0 : i32
    %c0_i32_0 = arith.constant 0 : i32
    return %arg0, %c0_i32 : i32, i32
  }
  func.func @transform_1(%arg0: i32) -> (i32, i32) {
    %c0_i32 = arith.constant 0 : i32
    %c0_i32_0 = arith.constant 0 : i32
    %c0_i32_1 = arith.constant 0 : i32
    return %c0_i32, %c0_i32_0 : i32, i32
  }
  func.func @transform_2(%arg0: i32) -> (i32, i32) {
    %c0_i32 = arith.constant 0 : i32
    %c0_i32_0 = arith.constant 0 : i32
    %c0_i32_1 = arith.constant 0 : i32
    return %c0_i32, %c0_i32_0 : i32, i32
  }
  func.func @transform_3(%arg0: i32) -> (i32, i32) {
    %c0_i32 = arith.constant 0 : i32
    %c0_i32_0 = arith.constant 0 : i32
    %c0_i32_1 = arith.constant 0 : i32
    return %c0_i32, %c0_i32_0 : i32, i32
  }
  func.func @transform_4(%arg0: i32) -> (i32, i32) {
    %c0_i32 = arith.constant 0 : i32
    %c0_i32_0 = arith.constant 0 : i32
    return %arg0, %c0_i32 : i32, i32
  }
  func.func @transform_5(%arg0: i32) -> (i32, i32, i32) {
    %c0_i32 = arith.constant 0 : i32
    %c0_i32_0 = arith.constant 0 : i32
    %c0_i32_1 = arith.constant 0 : i32
    return %arg0, %c0_i32, %c0_i32_0 : i32, i32, i32
  }
}

</mosaic_0001>

<bundles_post_ra>
// kernel: tpu_custom_call.1
= control target key start
LH: loop header
LB: loop body
LE: loop exit
PB: predicated region body
PF: predicated region fallthrough
CT: control target
= control target key end

     0   :  { %11 = vsyncpa [#allocation3], 0  ;;  %s1338_s0 = inlined_call_operand.vmem [shape: f32[512,36], index: 0, kind: input, shape index: {}]   ;;  %s1339_s1 = inlined_call_operand.vmem [shape: f32[36,128], index: 1, kind: input, shape index: {}]   ;;  %s1340_s2 = inlined_call_operand.vmem [shape: f32[1,128], index: 2, kind: input, shape index: {}]   ;;  %s1341_s3 = inlined_call_operand.vmem [shape: f32[1,128], index: 3, kind: input, shape index: {}]   ;;  %s1342_s4 = inlined_call_operand.hbm [shape: f32[512,128], index: 4, kind: output, shape index: {0}]   ;;  %s1343_s5 = inlined_call_operand.hbm [shape: f32[4,8,128], index: 5, kind: output, shape index: {1}]  }
   0x1   :  { %13 = vsyncpa [#allocation3 + $0x1], 0 }
   0x2   :  { %14 = vsyncpa [#allocation5], 0 }
   0x3   :  { %16 = vsyncpa [#allocation5 + $0x1], 0  ;;  %s1058_s18 = smov 0   ;;  %s1060_s19 = smov 0  }
   0x4   :  { %s1062_s20 = smov 0   ;;  %s1064_s21 = smov 0  }
   0x5 LB: > { %s1079_s22 = sadd.s32 4294967295, %s1022_s21   ;;  %s778_s23 = sadd.s32 4294967294, %s1022_s21   ;;  %s1022_s21 = sphi %s1064_s21, %s1349_s21   ;;  %s1018_s20 = sphi %s1062_s20, %s1348_s20   ;;  %s1014_s19 = sphi %s1060_s19, %s1347_s19   ;;  %s1010_s18 = sphi %s1058_s18, %s1346_s18  }
   0x6   : > { %s1083_s24 = sadd.s32 1, %s1022_s21   ;;  %s118_s25 = sadd.s32 1, %s1018_s20 }
   0x7   : > { %s115_s26 = ssub.s32 %s1022_s21, %s1083_s24  ;;  %p128_p0 = scmp.ne.s32.totalorder %s1018_s20, %s1014_s19 }
   0x8   : > { %p116_p1 = scmp.eq.s32.totalorder %s115_s26, 0  ;;  %p129_p2 = scmp.eq.s32.totalorder %s1079_s22, 3 }
   0x9   : > { %p134_p3 = scmp.ne.s32.totalorder %s1014_s19, %s1010_s18  ;;  %p135_p4 = scmp.eq.s32.totalorder %s778_s23, 3 }
   0xa   : > { %s1094_s27 = scalar_select %p116_p1, %s1018_s20, %s118_s25  }
   0xb   : > { %p1096_p5 = por %p129_p2, %p128_p0  ;;  %p1100_p6 = por %p135_p4, %p134_p3 }
   0xc   : > { %p781_p7 = scmp.ge.s32.totalorder %s1022_s21, 1  ;;  %p197_p8 = scmp.lt.s32.totalorder %s1022_s21, 5 }
   0xe   : > { %p198_p9 = pnand %p781_p7, %p197_p8 }
   0xf   : > { %v253_v0 = vld [vmem:[%s1339_s1] sm:$0xff] (!%p198_p9)  ;;  %v254_v1 = vld [vmem:[%s1339_s1 + $0x8] sm:$0xff] (!%p198_p9)  ;;  %v255_v2 = vld [vmem:[%s1339_s1 + $0x10] sm:$0xff] (!%p198_p9)  ;;  %s784_s11 = sshll.u32 (!%p198_p9), %s1079_s22, 4  ;;  %vm265_vm0 = vcmask (!%p198_p9), 293888   ;;  %vm314_vm1 = vcmask (!%p198_p9), 1043456  }
  0x10   : > { %201 = sbr.rel (%p198_p9) target bundleno = 328 (0x148), region = 36  ;;  %v868_v3 = vpack.c.bf16 (!%p198_p9), %v254_v1, %v253_v0  ;;  %v256_v4 = vld [vmem:[%s1339_s1 + $0x18] sm:$0xff] (!%p198_p9)  ;;  %p231_p10 = scmp.lt.s32.totalorder (!%p198_p9), %s784_s11, 63  ;;  %v257_v6 = vld [vmem:[%s1339_s1 + $0x20] sm:$0xf] (!%p198_p9) }
  0x11   : > { %v872_v5 = vpack.c.bf16 (!%p198_p9), %v256_v4, %v255_v2  ;;  %v1166_v23 = vld [vmem:[%s1340_s2] ss:$0 sm:$0xff] (!%p198_p9)  ;;  %s1169_s6 = sand.u32 (!%p198_p9), 1, %s1014_s19   ;;  %s1024_s23 = smov (!%p198_p9), [#allocation2]  }
  0x12   : > { %869 = vmatprep.subr.bf16.mxu0 (!%p198_p9), %v868_v3  ;;  %876 = vmatprep.subr.bf16.mxu1 (!%p198_p9), %v868_v3  ;;  %v1174_v25 = vld [vmem:[%s1341_s3] ss:$0 sm:$0xff] (!%p198_p9)  ;;  %s782_s9 = sshll.u32 (!%p198_p9), %s1169_s6, 7  ;;  %s653_s16 = scalar_lea.sflag (!%p198_p9), [#allocation3], %s1169_s6 }
  0x13   : > { %871 = vmatpush3.bf16.msra.mxu0 (!%p198_p9), %v868_v3  ;;  %879 = vmatpush3.bf16.msra.mxu1 (!%p198_p9), %v868_v3  ;;  %s1197_s10 = scalar_lea.vmem (!%p198_p9), [#allocation2], %s782_s9 }
  0x14   : > { %873 = vmatprep.subr.bf16.mxu0 (!%p198_p9), %v872_v5  ;;  %877 = vmatprep.subr.bf16.mxu1 (!%p198_p9), %v872_v5  ;;  %s671_s12 = sshll.u32 (!%p198_p9), %s1197_s10, 4  ;;  %s1263_s12 = int_to_ptr.vmem [resolvable:$true] %s671_s12 }
  0x15   : > { %s928_s17 = scalar_lea.vmem (!%p198_p9), %s1263_s12, 2048 }
  0x16   : > { %p929_p11 = scmp.ne.s32.totalorder (!%p198_p9), %s1263_s12, %s928_s17 }
  0x17   : > { %s1351_s11 = smov (!%p231_p10, %s784_s11), 63  ;;  %875 = vmatpush3.bf16.msra.mxu0 %v872_v5  ;;  %880 = vmatpush3.bf16.msra.mxu1 %v872_v5 }
  0x18   : > { %s785_s14 = sshll.u32 %s1351_s11, 3  ;;  %842 = vmatprep.subr.msk.mxu0 %vm314_vm1, %v257_v6  ;;  %878 = vmatprep.subr.msk.mxu1 %vm314_vm1, %v257_v6  ;;  %s812_s11 = sshll.u32 %s1079_s22, 11 }
  0x19   : > { %s1125_s25 = scalar_lea.vmem %s1338_s0, %s785_s14  ;;  %s1261_s15 = scalar_lea.hbm %s1342_s4, %s812_s11 }
  0x1a   : > { %v237_v7 = vld [vmem:[%s1125_s25] sm:$0xff]  ;;  %v238_v9 = vld [vmem:[%s1125_s25 + $0x8] sm:$0xff]  ;;  %v239_v10 = vld [vmem:[%s1125_s25 + $0x10] sm:$0xff]  ;;  %p930_p12 = pnand %p929_p11, %p1096_p5 }
  0x1b   : > { %844 = vmatprep.mubr.msk.f32.mxu0 %vm265_vm0, %v237_v7  ;;  %v245_v8 = vld [vmem:[%s1125_s25 + $0x40] sm:$0xff]  ;;  %v246_v11 = vld [vmem:[%s1125_s25 + $0x48] sm:$0xff]  ;;  %843 = vmatpush3.msk.msra.mxu0 %vm314_vm1, %v257_v6  ;;  %v247_v12 = vld [vmem:[%s1125_s25 + $0x50] sm:$0xff] }
  0x1c   : > { %856 = vmatprep.mubr.msk.f32.mxu1 %vm265_vm0, %v245_v8  ;;  %845 = vmatmul.mubr.msk.f32.vlgmr.msra.gmra.mrb[0].mxu0 %vm265_vm0, %v238_v9  ;;  %v240_v13 = vld [vmem:[%s1125_s25 + $0x18] sm:$0xff]  ;;  %v241_v14 = vld [vmem:[%s1125_s25 + $0x20] sm:$0xff]  ;;  %v242_v17 = vld [vmem:[%s1125_s25 + $0x28] sm:$0xff]  ;;  %p931_p13 = pneg %p930_p12 }
  0x1d   : > { %881 = vmatpush3.msk.msra.mxu1 %vm314_vm1, %v257_v6  ;;  %847 = vmatprep.mubr.msk.f32.mxu0 %vm265_vm0, %v239_v10  ;;  %v248_v15 = vld [vmem:[%s1125_s25 + $0x58] sm:$0xff]  ;;  %v249_v16 = vld [vmem:[%s1125_s25 + $0x60] sm:$0xff]  ;;  %v243_v18 = vld [vmem:[%s1125_s25 + $0x30] sm:$0xff] }
  0x1e   : > { %857 = vmatmul.mubr.msk.f32.vlgmr.msra.gmra.mrb[0].mxu1 %vm265_vm0, %v246_v11  ;;  %v250_v19 = vld [vmem:[%s1125_s25 + $0x68] sm:$0xff]  ;;  %v251_v20 = vld [vmem:[%s1125_s25 + $0x70] sm:$0xff]  ;;  %v244_v21 = vld [vmem:[%s1125_s25 + $0x38] sm:$0xff] }
  0x1f   : > { %859 = vmatprep.mubr.msk.f32.mxu1 %vm265_vm0, %v247_v12  ;;  %v252_v22 = vld [vmem:[%s1125_s25 + $0x78] sm:$0xff]  ;;  %s932_s25 = sshll.u32 %s1024_s23, 4  ;;  %s933_s25 = int_to_ptr.vmem [resolvable:$false] %s932_s25 }
  0x20   : > { %848 = vmatmul.mubr.msk.f32.gmra.mrb[2].mxu0 %vm265_vm0, %v240_v13  ;;  %s934_s26 = scalar_lea.vmem %s933_s25, 4096  ;;  %p935_p0 = scmp.lt.s32.totalorder %s1263_s12, %s933_s25 }
  0x21   : > { %850 = vmatprep.mubr.msk.f32.mxu0 %vm265_vm0, %v241_v14  ;;  %p936_p1 = scmp.lt.s32.totalorder %s934_s26, %s928_s17 }
  0x22   : > { %860 = vmatmul.mubr.msk.f32.gmra.mrb[2].mxu1 %vm265_vm0, %v248_v15 }
  0x23   : > { %862 = vmatprep.mubr.msk.f32.mxu1 %vm265_vm0, %v249_v16  ;;  %p937_p2 = por %p936_p1, %p935_p0 }
  0x24   : > { %851 = vmatmul.mubr.msk.f32.gmra.mrb[4].mxu0 %vm265_vm0, %v242_v17 }
  0x25   : > { %853 = vmatprep.mubr.msk.f32.mxu0 %vm265_vm0, %v243_v18  ;;  %p938_p3 = pnand %p937_p2, %p931_p13 }
  0x26   : > { %863 = vmatmul.mubr.msk.f32.gmra.mrb[4].mxu1 %vm265_vm0, %v250_v19 }
  0x27   : > { %865 = vmatprep.mubr.msk.f32.mxu1 %vm265_vm0, %v251_v20 }
  0x28   : > { %854 = vmatmul.mubr.msk.f32.gmra.mrb[6].mxu0 %vm265_vm0, %v244_v21 }
  0x2a   : > { %866 = vmatmul.mubr.msk.f32.gmra.mrb[6].mxu1 %vm265_vm0, %v252_v22 }
  0xef   : > { %v846_v24 = vpop.f32.mrb[0].mxu0 }
  0xf0   : > { %v390_v26 = vadd.f32 %v846_v24, %v1166_v23  ;;  %v384_v27 = vpop.f32.mrb[1].mxu0 }
  0xf1   : > { %v858_v28 = vpop.f32.mrb[0].mxu1  ;;  %v385_v29 = vadd.f32 %v1166_v23, %v384_v27 }
  0xf2   : > { %v430_v30 = vadd.f32 %v858_v28, %v1166_v23  ;;  %v424_v31 = vpop.f32.mrb[1].mxu1  ;;  %v471_v32 = vmul.f32 %v1174_v25, %v390_v26 }
  0xf3   : > { %v470_v33 = vmul.f32 %v1174_v25, %v385_v29  ;;  %v849_v34 = vpop.f32.mrb[2].mxu0  ;;  %v425_v48 = vadd.f32 %v1166_v23, %v424_v31 }
  0xf4   : > { %v1183_v35 = vmul.f32 %v1174_v25, %v430_v30  ;;  %v487_v36 = vmul.f32 %v471_v32, %v471_v32  ;;  %vm524_vm2 = vcmp.gt.f32.partialorder %v471_v32, 0.0  ;;  %v540_v37 = vmul.f32 0.01, %v471_v32  ;;  %v394_v39 = vpop.f32.mrb[3].mxu0 }
  0xf5   : > { %v400_v38 = vadd.f32 %v849_v34, %v1166_v23  ;;  %v1186_v40 = vpop.f32.mrb[2].mxu1  ;;  %v486_v41 = vmul.f32 %v470_v33, %v470_v33  ;;  %vm523_vm3 = vcmp.gt.f32.partialorder %v470_v33, 0.0  ;;  %v539_v42 = vmul.f32 0.01, %v470_v33 }
  0xf6   : > { %v395_v43 = vadd.f32 %v1166_v23, %v394_v39  ;;  %v1189_v44 = vpop.f32.mrb[3].mxu1  ;;  %v556_v45 = vsel %vm524_vm2, %v471_v32, %v540_v37  ;;  %v1194_v47 = vmul.f32 %v1183_v35, %v1183_v35  ;;  %vm532_vm5 = vcmp.gt.f32.partialorder %v1183_v35, 0.0 }
  0xf7   : > { %v473_v46 = vmul.f32 %v1174_v25, %v400_v38  ;;  %v593_v49 = vmul.f32 %v556_v45, %v556_v45  ;;  %630 = vst [vmem:[%s1197_s10 + $0x8] sm:$0xff] %v556_v45  ;;  %v502_v50 = vadd.f32 %v487_v36, %v486_v41  ;;  %v555_v51 = vsel %vm523_vm3, %v470_v33, %v539_v42  ;;  %v852_v53 = vpop.f32.mrb[4].mxu0 }
  0xf8   : > { %v472_v52 = vmul.f32 %v1174_v25, %v395_v43  ;;  %v571_v54 = vadd.f32 %v556_v45, %v555_v51  ;;  %v592_v55 = vmul.f32 %v555_v51, %v555_v51  ;;  %629 = vst [vmem:[%s1197_s10] sm:$0xff] %v555_v51  ;;  %v404_v56 = vpop.f32.mrb[5].mxu0  ;;  %v410_v0 = vadd.f32 %v852_v53, %v1166_v23 }
  0xf9   : > { %vm526_vm4 = vcmp.gt.f32.partialorder %v473_v46, 0.0  ;;  %v1203_v57 = vpop.f32.mrb[4].mxu1  ;;  %v542_v58 = vmul.f32 0.01, %v473_v46  ;;  %v489_v63 = vmul.f32 %v473_v46, %v473_v46  ;;  %v405_v1 = vadd.f32 %v1166_v23, %v404_v56 }
  0xfa   : > { %v488_v59 = vmul.f32 %v472_v52, %v472_v52  ;;  %vm525_vm6 = vcmp.gt.f32.partialorder %v472_v52, 0.0  ;;  %v541_v60 = vmul.f32 0.01, %v472_v52  ;;  %v1205_v61 = vpop.f32.mrb[5].mxu1  ;;  %v608_v62 = vadd.f32 %v593_v49, %v592_v55 }
  0xfb   : > { %v558_v2 = vsel %vm526_vm4, %v473_v46, %v542_v58  ;;  %v855_v5 = vpop.f32.mrb[6].mxu0  ;;  %v548_v6 = vmul.f32 0.01, %v1183_v35  ;;  %v475_v9 = vmul.f32 %v1174_v25, %v410_v0  ;;  %v478_v11 = vmul.f32 %v1174_v25, %v425_v48 }
  0xfc   : > { %v503_v3 = vadd.f32 %v502_v50, %v488_v59  ;;  %v557_v4 = vsel %vm525_vm6, %v472_v52, %v541_v60  ;;  %632 = vst [vmem:[%s1197_s10 + $0x18] sm:$0xff] %v558_v2  ;;  %v414_v10 = vpop.f32.mrb[7].mxu0  ;;  %v474_v13 = vmul.f32 %v1174_v25, %v405_v1  ;;  %v420_v15 = vadd.f32 %v855_v5, %v1166_v23 }
  0xfd   : > { %v572_v7 = vadd.f32 %v571_v54, %v557_v4  ;;  %v594_v8 = vmul.f32 %v557_v4, %v557_v4  ;;  %631 = vst [vmem:[%s1197_s10 + $0x10] sm:$0xff] %v557_v4  ;;  %v1214_v12 = vpop.f32.mrb[6].mxu1  ;;  %v415_v16 = vadd.f32 %v1166_v23, %v414_v10  ;;  %v595_v18 = vmul.f32 %v558_v2, %v558_v2 }
  0xfe   : > { %v504_v14 = vadd.f32 %v503_v3, %v489_v63  ;;  %v1219_v17 = vpop.f32.mrb[7].mxu1  ;;  %vm528_vm7 = vcmp.gt.f32.partialorder %v475_v9, 0.0  ;;  %v544_v20 = vmul.f32 0.01, %v475_v9  ;;  %v490_v21 = vmul.f32 %v474_v13, %v474_v13 }
  0xff   : > { %v609_v19 = vadd.f32 %v608_v62, %v594_v8  ;;  %vm527_vm8 = vcmp.gt.f32.partialorder %v474_v13, 0.0  ;;  %v543_v22 = vmul.f32 0.01, %v474_v13  ;;  %v573_v24 = vadd.f32 %v572_v7, %v558_v2 }
 0x100   : > { %v560_v26 = vsel %vm528_vm7, %v475_v9, %v544_v20  ;;  %v477_v28 = vmul.f32 %v1174_v25, %v420_v15  ;;  %v476_v29 = vmul.f32 %v1174_v25, %v415_v16  ;;  %v491_v30 = vmul.f32 %v475_v9, %v475_v9 }
 0x101   : > { %v610_v27 = vadd.f32 %v609_v19, %v595_v18  ;;  %634 = vst [vmem:[%s1197_s10 + $0x28] sm:$0xff] %v560_v26  ;;  %v505_v31 = vadd.f32 %v504_v14, %v490_v21  ;;  %v559_v32 = vsel %vm527_vm8, %v474_v13, %v543_v22  ;;  %v564_v33 = vsel %vm532_vm5, %v1183_v35, %v548_v6 }
 0x102   : > { %v597_v34 = vmul.f32 %v560_v26, %v560_v26  ;;  %v574_v36 = vadd.f32 %v573_v24, %v559_v32  ;;  %v596_v37 = vmul.f32 %v559_v32, %v559_v32  ;;  %633 = vst [vmem:[%s1197_s10 + $0x20] sm:$0xff] %v559_v32  ;;  %vm530_vm9 = vcmp.gt.f32.partialorder %v477_v28, 0.0  ;;  %638 = vst [vmem:[%s1197_s10 + $0x48] sm:$0xff] %v564_v33 }
 0x103   : > { %v546_v38 = vmul.f32 0.01, %v477_v28  ;;  %v492_v39 = vmul.f32 %v476_v29, %v476_v29  ;;  %v506_v41 = vadd.f32 %v505_v31, %v491_v30  ;;  %vm529_vm10 = vcmp.gt.f32.partialorder %v476_v29, 0.0 }
 0x104   : > { %v611_v42 = vadd.f32 %v610_v27, %v596_v37  ;;  %v493_v43 = vmul.f32 %v477_v28, %v477_v28  ;;  %v545_v45 = vmul.f32 0.01, %v476_v29  ;;  %v575_v46 = vadd.f32 %v574_v36, %v560_v26 }
 0x105   : > { %v562_v48 = vsel %vm530_vm9, %v477_v28, %v546_v38  ;;  %v507_v49 = vadd.f32 %v506_v41, %v492_v39  ;;  %v494_v50 = vmul.f32 %v478_v11, %v478_v11  ;;  %vm531_vm11 = vcmp.gt.f32.partialorder %v478_v11, 0.0 }
 0x106   : > { %636 = vst [vmem:[%s1197_s10 + $0x38] sm:$0xff] %v562_v48  ;;  %v561_v35 = vsel %vm529_vm10, %v476_v29, %v545_v45  ;;  %v612_v51 = vadd.f32 %v611_v42, %v597_v34  ;;  %v601_v52 = vmul.f32 %v564_v33, %v564_v33  ;;  %v547_v53 = vmul.f32 0.01, %v478_v11 }
 0x107   : > { %v576_v54 = vadd.f32 %v575_v46, %v561_v35  ;;  %v598_v55 = vmul.f32 %v561_v35, %v561_v35  ;;  %635 = vst [vmem:[%s1197_s10 + $0x30] sm:$0xff] %v561_v35  ;;  %v508_v56 = vadd.f32 %v507_v49, %v493_v43  ;;  %v440_v58 = vadd.f32 %v1186_v40, %v1166_v23 }
 0x108   : > { %v563_v59 = vsel %vm531_vm11, %v478_v11, %v547_v53  ;;  %v435_v60 = vadd.f32 %v1166_v23, %v1189_v44  ;;  %v450_v62 = vadd.f32 %v1203_v57, %v1166_v23  ;;  %v445_v63 = vadd.f32 %v1166_v23, %v1205_v61 }
 0x109   : > { %v599_v0 = vmul.f32 %v562_v48, %v562_v48  ;;  %v613_v1 = vadd.f32 %v612_v51, %v598_v55  ;;  %v509_v2 = vadd.f32 %v508_v56, %v494_v50  ;;  %v577_v3 = vadd.f32 %v576_v54, %v562_v48  ;;  %637 = vst [vmem:[%s1197_s10 + $0x40] sm:$0xff] %v563_v59 }
 0x10a   : > { %v600_v4 = vmul.f32 %v563_v59, %v563_v59  ;;  %v481_v5 = vmul.f32 %v1174_v25, %v440_v58  ;;  %v480_v40 = vmul.f32 %v1174_v25, %v435_v60  ;;  %v483_v6 = vmul.f32 %v1174_v25, %v450_v62 }
 0x10b   : > { %v578_v7 = vadd.f32 %v577_v3, %v563_v59  ;;  %v614_v44 = vadd.f32 %v613_v1, %v599_v0  ;;  %v510_v57 = vadd.f32 %v509_v2, %v1194_v47  ;;  %v482_v8 = vmul.f32 %v1174_v25, %v445_v63 }
 0x10c   : > { %vm534_vm12 = vcmp.gt.f32.partialorder %v481_v5, 0.0  ;;  %v550_v61 = vmul.f32 0.01, %v481_v5  ;;  %v496_v9 = vmul.f32 %v480_v40, %v480_v40  ;;  %v460_v10 = vadd.f32 %v1214_v12, %v1166_v23 }
 0x10d   : > { %v615_v11 = vadd.f32 %v614_v44, %v600_v4  ;;  %vm533_vm13 = vcmp.gt.f32.partialorder %v480_v40, 0.0  ;;  %v549_v13 = vmul.f32 0.01, %v480_v40  ;;  %v579_v14 = vadd.f32 %v578_v7, %v564_v33 }
 0x10e   : > { %v497_v15 = vmul.f32 %v481_v5, %v481_v5  ;;  %v566_v16 = vsel %vm534_vm12, %v481_v5, %v550_v61  ;;  %v511_v18 = vadd.f32 %v510_v57, %v496_v9  ;;  %vm536_vm14 = vcmp.gt.f32.partialorder %v483_v6, 0.0 }
 0x10f   : > { %640 = vst [vmem:[%s1197_s10 + $0x58] sm:$0xff] %v566_v16  ;;  %v565_v47 = vsel %vm533_vm13, %v480_v40, %v549_v13  ;;  %v616_v19 = vadd.f32 %v615_v11, %v601_v52  ;;  %v552_v20 = vmul.f32 0.01, %v483_v6  ;;  %v498_v24 = vmul.f32 %v482_v8, %v482_v8 }
 0x110   : > { %v580_v21 = vadd.f32 %v579_v14, %v565_v47  ;;  %v602_v22 = vmul.f32 %v565_v47, %v565_v47  ;;  %639 = vst [vmem:[%s1197_s10 + $0x50] sm:$0xff] %v565_v47  ;;  %v512_v26 = vadd.f32 %v511_v18, %v497_v15  ;;  %vm535_vm15 = vcmp.gt.f32.partialorder %v482_v8, 0.0 }
 0x111   : > { %v568_v27 = vsel %vm536_vm14, %v483_v6, %v552_v20  ;;  %v551_v12 = vmul.f32 0.01, %v482_v8  ;;  %v485_v28 = vmul.f32 %v1174_v25, %v460_v10  ;;  %v603_v29 = vmul.f32 %v566_v16, %v566_v16 }
 0x112   : > { %v617_v30 = vadd.f32 %v616_v19, %v602_v22  ;;  %642 = vst [vmem:[%s1197_s10 + $0x68] sm:$0xff] %v568_v27  ;;  %v513_v31 = vadd.f32 %v512_v26, %v498_v24  ;;  %v581_v32 = vadd.f32 %v580_v21, %v566_v16  ;;  %v499_v33 = vmul.f32 %v483_v6, %v483_v6 }
 0x113   : > { %v567_v34 = vsel %vm535_vm15, %v482_v8, %v551_v12  ;;  %vm538_vm0 = vcmp.gt.f32.partialorder %v485_v28, 0.0  ;;  %v554_v36 = vmul.f32 0.01, %v485_v28  ;;  %v455_v41 = vadd.f32 %v1166_v23, %v1219_v17 }
 0x114   : > { %v582_v37 = vadd.f32 %v581_v32, %v567_v34  ;;  %v604_v38 = vmul.f32 %v567_v34, %v567_v34  ;;  %v618_v39 = vadd.f32 %v617_v30, %v603_v29  ;;  %641 = vst [vmem:[%s1197_s10 + $0x60] sm:$0xff] %v567_v34  ;;  %v514_v43 = vadd.f32 %v513_v31, %v499_v33 }
 0x115   : > { %v570_v42 = vsel %vm538_vm0, %v485_v28, %v554_v36  ;;  %v605_v45 = vmul.f32 %v568_v27, %v568_v27  ;;  %v484_v48 = vmul.f32 %v1174_v25, %v455_v41  ;;  %v501_v23 = vmul.f32 %v485_v28, %v485_v28 }
 0x116   : > { %v619_v46 = vadd.f32 %v618_v39, %v604_v38  ;;  %644 = vst [vmem:[%s1197_s10 + $0x78] sm:$0xff] %v570_v42  ;;  %v583_v49 = vadd.f32 %v582_v37, %v568_v27 }
 0x117   : > { %v500_v50 = vmul.f32 %v484_v48, %v484_v48  ;;  %vm537_vm1 = vcmp.gt.f32.partialorder %v484_v48, 0.0  ;;  %v553_v35 = vmul.f32 0.01, %v484_v48 }
 0x118   : > { %v620_v51 = vadd.f32 %v619_v46, %v605_v45 }
 0x119   : > { %v515_v17 = vadd.f32 %v514_v43, %v500_v50  ;;  %v569_v52 = vsel %vm537_vm1, %v484_v48, %v553_v35 }
 0x11a   : > { %v584_v25 = vadd.f32 %v583_v49, %v569_v52  ;;  %v606_v53 = vmul.f32 %v569_v52, %v569_v52  ;;  %643 = vst [vmem:[%s1197_s10 + $0x70] sm:$0xff] %v569_v52 }
 0x11b   : > { %v516_v54 = vadd.f32 %v515_v17, %v501_v23 }
 0x11c   : > { %941 = shalt.err (!%p938_p3)
}
 0x11d   : > { %s942_s30 = scalar_lea.hbm %s1261_s15, 2048  ;;  %s946_s9 = scalar_lea.hbm %s1342_s4, 8192 }
 0x11e   : > { %p943_p4 = scmp.ne.s32.totalorder %s1261_s15, %s942_s30  ;;  %p947_p9 = scmp.lt.u32.totalorder %s1261_s15, %s1342_s4 }
 0x11f   : > { %p948_p10 = scmp.lt.u32.totalorder %s946_s9, %s942_s30  ;;  %p950_p12 = scmp.lt.u32.totalorder %s942_s30, %s1261_s15 }
 0x120   : > { %p944_p7 = pnand %p943_p4, %p1096_p5 }
 0x121   : > { %p949_p11 = por %p948_p10, %p947_p9 }
 0x122   : > { %p945_p8 = pneg %p944_p7 }
 0x123   : > { %p951_p13 = por %p950_p12, %p949_p11 }
 0x125   : > { %p952_p0 = pnand %p951_p13, %p945_p8 }
 0x127   : > { %955 = shalt.err (!%p952_p0)
}
 0x128   : > { %s1025_s13 = smov 128   ;;  %s1026_s14 = smov 8   ;;  %v607_v55 = vmul.f32 %v570_v42, %v570_v42  ;;  %v585_v56 = vadd.f32 %v584_v25, %v570_v42  ;;  %v621_v58 = vadd.f32 %v620_v51, %v606_v53  ;;  %v517_v59 = vrot.slane %v516_v54, 4 }
 0x129   : > { %882 = dma.vmem_to_hbm [thread:$0]  (%p1096_p5), %s1263_s12, 2048, %s1261_s15, %s653_s16, %s1025_s13, %s1025_s13, %s1026_s14   ;;  %vm645_vm2 = vcmask 1040384   ;;  %vm647_vm3 = vcmask 1041408   ;;  %vm649_vm4 = vcmask 1042432  }
 0x12a   : > { %v586_v60 = vrot.slane %v585_v56, 4  ;;  %v622_v62 = vadd.f32 %v621_v58, %v607_v55  ;;  %v518_v63 = vadd.f32 %v517_v59, %v516_v54  ;;  %s783_s17 = sshll.u32 %s1169_s6, 3  ;;  %s809_s12 = sshll.u32 %s1079_s22, 7 }
 0x12b   : > { %s229_s15 = scalar_lea.vmem [#allocation4], %s783_s17  ;;  %s1295_s26 = scalar_lea.hbm %s1343_s5, %s809_s12 }
 0x12c   : > { %v587_v0 = vadd.f32 %v586_v60, %v585_v56  ;;  %v623_v1 = vrot.slane %v622_v62, 4  ;;  %v519_v2 = vrot.slane %v518_v63, 2  ;;  %s687_s16 = sshll.u32 %s229_s15, 4  ;;  %s658_s30 = scalar_lea.sflag [#allocation5], %s1169_s6  ;;  %s1297_s16 = int_to_ptr.vmem [resolvable:$true] %s687_s16 }
 0x12d   : > { %s956_s22 = scalar_lea.vmem %s1297_s16, 128  ;;  %s1027_s7 = smov [#allocation4]  }
 0x12e   : > { %v588_v3 = vrot.slane %v587_v0, 2  ;;  %v624_v4 = vadd.f32 %v623_v1, %v622_v62  ;;  %v520_v5 = vadd.f32 %v519_v2, %v518_v63  ;;  %p957_p1 = scmp.ne.s32.totalorder %s1297_s16, %s956_s22  ;;  %s960_s8 = sshll.u32 %s1027_s7, 4  ;;  %s961_s8 = int_to_ptr.vmem [resolvable:$false] %s960_s8 }
 0x12f   : > { %s962_s9 = scalar_lea.vmem %s961_s8, 256  ;;  %p963_p4 = scmp.lt.s32.totalorder %s1297_s16, %s961_s8 }
 0x130   : > { %v589_v40 = vadd.f32 %v588_v3, %v587_v0  ;;  %v625_v6 = vrot.slane %v624_v4, 2  ;;  %v521_v7 = vrot.slane %v520_v5, 1  ;;  %p958_p2 = pnand %p957_p1, %p1096_p5  ;;  %p964_p7 = scmp.lt.s32.totalorder %s962_s9, %s956_s22 }
 0x132   : > { %v590_v44 = vrot.slane %v589_v40, 1  ;;  %v626_v57 = vadd.f32 %v625_v6, %v624_v4  ;;  %v522_v8 = vadd.f32 %v521_v7, %v520_v5  ;;  %p959_p3 = pneg %p958_p2  ;;  %p965_p8 = por %p964_p7, %p963_p4 }
 0x134   : > { %v591_v61 = vadd.f32 %v590_v44, %v589_v40  ;;  %v627_v9 = vrot.slane %v626_v57, 1  ;;  %p966_p9 = pnand %p965_p8, %p959_p3 }
 0x136   : > { %v628_v10 = vadd.f32 %v627_v9, %v626_v57  ;;  %v646_v11 = vsel %vm645_vm2, %v522_v8, %v591_v61 }
 0x138   : > { %v648_v13 = vsel %vm647_vm3, %v646_v11, %v628_v10 }
 0x139   : > { %v650_v14 = vsel %vm649_vm4, %v648_v13, 0.0 }
 0x13a   : > { %651 = vst [vmem:[%s229_s15] sm:$0xff] %v650_v14 }
 0x13b   : > { %969 = shalt.err (!%p966_p9)
}
 0x13c   : > { %s970_s6 = scalar_lea.hbm %s1295_s26, 128  ;;  %s974_s13 = scalar_lea.hbm %s1343_s5, 512 }
 0x13d   : > { %p971_p10 = scmp.ne.s32.totalorder %s1295_s26, %s970_s6  ;;  %p975_p13 = scmp.lt.u32.totalorder %s1295_s26, %s1343_s5 }
 0x13e   : > { %p976_p0 = scmp.lt.u32.totalorder %s974_s13, %s970_s6  ;;  %p978_p2 = scmp.lt.u32.totalorder %s970_s6, %s1295_s26 }
 0x13f   : > { %p972_p11 = pnand %p971_p10, %p1096_p5 }
 0x140   : > { %p977_p1 = por %p976_p0, %p975_p13 }
 0x141   : > { %p973_p12 = pneg %p972_p11 }
 0x142   : > { %p979_p3 = por %p978_p2, %p977_p1 }
 0x144   : > { %p980_p4 = pnand %p979_p3, %p973_p12 }
 0x146   : > { %983 = shalt.err (!%p980_p4)
}
 0x147   : > { %883 = dma.vmem_to_hbm [thread:$0]  (%p1096_p5), %s1297_s16, 128, %s1295_s26, %s658_s30  }
 0x148 PF: > { %p893_p7 = scmp.ge.s32.totalorder %s1022_s21, 2  ;;  %s699_s12 = sand.u32 1, %s1010_s18  }
 0x149   : > { %s700_s15 = scalar_lea.sflag [#allocation3], %s699_s12 }
 0x14a   : > { %p887_p8 = pnand %p893_p7, %p1100_p6 }
 0x14c   : > { %1001 = dma.done.wait (!%p887_p8), %s700_s15, 2048  }
 0x14d   : > { %1003 = vsyncadd (!%p887_p8), %s700_s15, 4294965248  ;;  %s709_s23 = scalar_lea.sflag [#allocation5], %s699_s12 }
 0x14e   : > { %1005 = dma.done.wait (!%p887_p8), %s709_s23, 128  }
 0x14f   : > { %1007 = vsyncadd (!%p887_p8), %s709_s23, 4294967168  ;;  %p19_p5 = scmp.ge.s32.totalorder %s1083_s24, 6   ;;  %s1346_s18 = smov %s1014_s19 }
 0x150   : > { %s1347_s19 = smov %s1018_s20  ;;  %s1348_s20 = smov %s1094_s27 }
 0x151   : > { %s1349_s21 = smov %s1083_s24  ;;  %21 = sbr.rel (!%p19_p5) target bundleno = 5 (0x5), region = 88 }
 0x158   :  { %714 = vsyncpa [#allocation3], 1 }
 0x159   :  { %716 = vsyncpa [#allocation3 + $0x1], 1 }
 0x15a   :  { %717 = vsyncpa [#allocation5], 1 }
 0x15b   :  { %719 = vsyncpa [#allocation5 + $0x1], 1 }

</bundles_post_ra>
